<compile_context>
chip_gen: v7x
topology: tpu7x:2x2x1
jax: 0.10.0
libtpu: 0.0.40
codegen_flags: <defaults>
</compile_context>

<pallas_src>
from functools import partial

import jax
import jax.numpy as jnp
from jax.experimental import pallas as pl
from jax.experimental.pallas import tpu as pltpu


def _dwconv_kernel(top_ref, band_ref, bot_ref, w_ref, b_ref, o_ref, *, TH, C, WC):
    """One (batch-block, row-band) tile of the depthwise 3x3 conv.

    top_ref : (BB, 1, 1, WC) row directly above the band (clamped; zeroed at image top)
    band_ref: (BB, TH, WC)   the band of output rows (lane-dense: lanes = W*C)
    bot_ref : (BB, 1, 1, WC) row directly below the band (clamped; zeroed at image bottom)
    w_ref   : (9, WC) f32    wide taps, row k = kh*3 + kw, tiled over W with the
                             W-boundary wrap lanes already zeroed (no in-kernel masking)
    b_ref   : (1, WC) f32    wide bias
    o_ref   : (BB, TH, WC)
    """
    i = pl.program_id(1)
    last = pl.num_programs(1) - 1
    f32 = jnp.float32
    BB = band_ref.shape[0]

    band = band_ref[...].astype(f32)                           # (BB, TH, WC)
    top = top_ref[...].reshape(BB, 1, WC).astype(f32)
    bot = bot_ref[...].reshape(BB, 1, WC).astype(f32)
    # Halo rows that fall outside the image (index_map clamped them) -> zero pad.
    top = jnp.where(i == 0, 0.0, top)
    bot = jnp.where(i == last, 0.0, bot)

    # Row groups aligned with the output rows: x[h-1], x[h], x[h+1].
    # Sublane roll (XLU slot) + a single 1-row select against the halo row;
    # no (TH+2)-row concatenated working tile is materialized.
    row = jax.lax.broadcasted_iota(jnp.int32, (1, TH, 1), 1)
    up = jnp.where(row == 0, top, pltpu.roll(band, shift=1, axis=1))
    down = jnp.where(row == TH - 1, bot, pltpu.roll(band, shift=TH - 1, axis=1))
    rows = (up, band, down)

    # Lane shifts for the kw = 0 / 2 taps (wrap lanes contribute 0 because the
    # corresponding wide-tap lanes were zeroed host-side).
    sh_l = C % WC            # value at lane w*C+c becomes x[.., w-1, c]
    sh_r = (WC - C) % WC     # value at lane w*C+c becomes x[.., w+1, c]

    # Bias-initialized accumulator (saves a separate full-tile add).
    acc = jnp.broadcast_to(b_ref[0, :], (BB, TH, WC))
    for kh in range(3):
        r = rows[kh]
        left = pltpu.roll(r, shift=sh_l, axis=2)
        right = pltpu.roll(r, shift=sh_r, axis=2)
        acc = acc + left * w_ref[3 * kh + 0, :]
        acc = acc + r * w_ref[3 * kh + 1, :]
        acc = acc + right * w_ref[3 * kh + 2, :]
    o_ref[...] = acc.astype(o_ref.dtype)


def _divisors(n):
    return [d for d in range(1, n + 1) if n % d == 0]


def _step_bytes(BB, TH, WC, elt):
    """Conservative per-grid-step VMEM footprint estimate."""
    band_io = BB * TH * WC * elt
    halo_io = 2 * BB * WC * elt
    w_io = 10 * WC * 4
    temps = 8 * BB * TH * WC * 4        # in-kernel f32 temporaries (band/up/down/acc/rolls)
    return 2 * (band_io + halo_io + w_io) + 2 * band_io + temps


def _choose_tiling(B, H, WC, elt, band_rows=None, batch_block=None):
    try:
        vmem_cap = int(pltpu.get_tpu_info().vmem_capacity_bytes)
    except Exception:                    # conservative fallback = v7x per-TC VMEM
        vmem_cap = 64 << 20
    budget = int(0.45 * vmem_cap)        # keep the working set well under VMEM

    # Band rows: must be a multiple of 8 (sublane tiling) or the full H.
    cands = sorted({H} | {d for d in _divisors(H) if d % 8 == 0}, reverse=True)
    if band_rows is not None:
        assert H % band_rows == 0 and (band_rows % 8 == 0 or band_rows == H)
        TH = band_rows
    else:
        TH = next((t for t in cands if _step_bytes(1, t, WC, elt) <= budget),
                  min(cands))
        # TODO(synk): ragged last band (clamped index_map + masked final write)
        # would avoid whole-image bands for huge prime H; PVTv2 shapes are friendly.
    n_bands = H // TH

    # Batch-block tiny late-stage tiles toward ~2 MiB per grid step, but keep
    # >= 2 grid steps when the problem offers them (two v7x TensorCores).
    if batch_block is not None:
        assert B % batch_block == 0
        BB = batch_block
    else:
        BB = 1
        target = 2 << 20
        for bb in [d for d in _divisors(B) if d > 1]:
            if BB * TH * WC * elt >= target:
                break
            if _step_bytes(bb, TH, WC, elt) > budget:
                break
            if (B // bb) * n_bands < 2 and B * n_bands >= 2:
                break
            BB = bb

    vmem_limit = int(min(max(2 * _step_bytes(BB, TH, WC, elt), 16 << 20),
                         0.7 * vmem_cap))
    return BB, TH, n_bands, vmem_limit


def dwconv_forward(x, weight, bias, H, W, *, band_rows=None, batch_block=None):
    """x: (B, N, C); weight: (C, 1, 3, 3) [torch depthwise layout]; bias: (C,)."""
    B, N, C = x.shape
    assert N == H * W
    WC = W * C
    elt = x.dtype.itemsize

    BB, TH, n_bands, vmem_limit = _choose_tiling(
        B, H, WC, elt, band_rows=band_rows, batch_block=batch_block)

    # Lane-dense views of the same buffer (row-major bitcasts, no copies):
    #   (B, H, W*C) for the band / output, (B, H, 1, W*C) for the 1-row halos
    #   (keeps the halo block's last-two dims equal to full array dims).
    x_rows = x.reshape(B, H, WC)
    x_halo = x.reshape(B, H, 1, WC)

    # (C, 1, 3, 3) -> (3, 3, C) -> (9, C) -> tile over W -> (9, W*C), f32.
    # Fold the W zero-padding into the taps: kw=0 taps are zeroed on the w=0
    # lanes, kw=2 taps on the w=W-1 lanes, so the kernel needs no masking.
    w_taps = jnp.transpose(weight[:, 0], (1, 2, 0)).reshape(9, C).astype(jnp.float32)
    w_wide = jnp.tile(w_taps, (1, W))                       # lane l = w*C + c -> tap[c]
    wcol = jnp.arange(WC, dtype=jnp.int32) // C             # w index per lane
    mask_kw = jnp.stack([wcol >= 1,                         # kw = 0 (reads x[w-1])
                         jnp.ones((WC,), dtype=bool),       # kw = 1
                         wcol <= W - 2], axis=0)            # kw = 2 (reads x[w+1])
    w_wide = jnp.where(jnp.tile(mask_kw, (3, 1)), w_wide, 0.0)
    b_wide = jnp.tile(bias.astype(jnp.float32), W).reshape(1, WC)

    out = pl.pallas_call(
        partial(_dwconv_kernel, TH=TH, C=C, WC=WC),
        out_shape=jax.ShapeDtypeStruct((B, H, WC), x.dtype),
        grid=(B // BB, n_bands),
        in_specs=[
            # Halo row above the band (clamped to row 0; zeroed in-kernel at the top).
            pl.BlockSpec((BB, 1, 1, WC),
                         lambda b, i: (b, jnp.maximum(i * TH - 1, 0), 0, 0)),
            # The band itself.
            pl.BlockSpec((BB, TH, WC), lambda b, i: (b, i, 0)),
            # Halo row below the band (clamped to row H-1; zeroed in-kernel at the bottom).
            pl.BlockSpec((BB, 1, 1, WC),
                         lambda b, i: (b, jnp.minimum((i + 1) * TH, H - 1), 0, 0)),
            # Wide taps / bias: constant blocks, stay resident across the grid.
            pl.BlockSpec((9, WC), lambda b, i: (0, 0)),
            pl.BlockSpec((1, WC), lambda b, i: (0, 0)),
        ],
        out_specs=pl.BlockSpec((BB, TH, WC), lambda b, i: (b, i, 0)),
        compiler_params=pltpu.CompilerParams(
            dimension_semantics=("parallel", "parallel"),
            vmem_limit_bytes=vmem_limit,
        ),
    )(x_halo, x_rows, x_halo, w_wide, b_wide)

    # (B, H, W*C) and (B, H*W, C) share the same row-major layout.
    return out.reshape(B, N, C)


def dwconv_reference(x, weight, bias, H, W):
    """Pure-JAX reference via lax depthwise conv (NCHW, matching PyTorch)."""
    B, N, C = x.shape
    x_nchw = jnp.transpose(x, (0, 2, 1)).reshape(B, C, H, W)
    y = jax.lax.conv_general_dilated(
        x_nchw, weight,
        window_strides=(1, 1), padding=((1, 1), (1, 1)),
        dimension_numbers=("NCHW", "OIHW", "NCHW"),
        feature_group_count=C,
    ) + bias[None, :, None, None]
    return jnp.transpose(y.reshape(B, C, H * W), (0, 2, 1))


if __name__ == "__main__":
    # Small but lane-friendly shapes: W*C = 128 (real PVTv2 stages are all
    # multiples of 128 as well: 56*64, 28*128, 14*320, 7*512).
    B, C, H, W = 2, 8, 16, 16
    N = H * W

    key = jax.random.PRNGKey(0)
    kx, kw, kb = jax.random.split(key, 3)
    x = jax.random.normal(kx, (B, N, C), dtype=jnp.float32)
    # Conv2d(dim, dim, 3, groups=dim) params: weight (dim, 1, 3, 3), bias (dim,)
    weight = jax.random.normal(kw, (C, 1, 3, 3), dtype=jnp.float32) * 0.1
    bias = jax.random.normal(kb, (C,), dtype=jnp.float32) * 0.1

    ref = dwconv_reference(x, weight, bias, H, W)

    # Auto tiling (whole image per band here, grid split over batch).
    out = dwconv_forward(x, weight, bias, H, W)
    out = jax.block_until_ready(out)
    assert out.shape == (B, N, C)
    assert jnp.allclose(out, ref, atol=1e-5, rtol=1e-5), "mismatch (auto tiling)"

    # Multi-band path (exercises the inter-band halo handling + batch blocking).
    out2 = dwconv_forward(x, weight, bias, H, W, band_rows=8)
    out2 = jax.block_until_ready(out2)
    assert jnp.allclose(out2, ref, atol=1e-5, rtol=1e-5), "mismatch (banded)"

    # Banded with BB = 1 (interior halos, per-image grid steps).
    out3 = dwconv_forward(x, weight, bias, H, W, band_rows=8, batch_block=1)
    out3 = jax.block_until_ready(out3)
    assert jnp.allclose(out3, ref, atol=1e-5, rtol=1e-5), "mismatch (banded, BB=1)"

    print("KERNEL_OK")
</pallas_src>

<mosaic_0001>
module attributes {stable_mosaic.version = 11 : i64} {
  func.func @_dwconv_kernel(%arg0: i32, %arg1: i32, %arg2: memref<1x1x1x128xf32, #tpu.memory_space<vmem>>, %arg3: memref<1x16x128xf32, #tpu.memory_space<vmem>>, %arg4: memref<1x1x1x128xf32, #tpu.memory_space<vmem>>, %arg5: memref<9x128xf32, #tpu.memory_space<vmem>>, %arg6: memref<1x128xf32, #tpu.memory_space<vmem>>, %arg7: memref<1x16x128xf32, #tpu.memory_space<vmem>>) attributes {dimension_semantics = [#tpu.dimension_semantics<parallel>, #tpu.dimension_semantics<parallel>], iteration_bounds = array<i64: 2, 1>, scalar_prefetch = 0 : i64, scratch_operands = 0 : i64, tpu.core_type = #tpu.core_type<tc>, window_params = [{transform_indices = @transform_0, window_bounds = array<i64: 1, 1, 1, 128>}, {transform_indices = @transform_1, window_bounds = array<i64: 1, 16, 128>}, {transform_indices = @transform_2, window_bounds = array<i64: 1, 1, 1, 128>}, {pipeline_mode = #tpu.pipeline_mode<synchronous>, transform_indices = @transform_3, window_bounds = array<i64: 9, 128>}, {pipeline_mode = #tpu.pipeline_mode<synchronous>, transform_indices = @transform_4, window_bounds = array<i64: 1, 128>}, {transform_indices = @transform_5, window_bounds = array<i64: 1, 16, 128>}]} {
    %c0 = arith.constant 0 : index
    %c0_0 = arith.constant 0 : index
    %c0_1 = arith.constant 0 : index
    %0 = vector.load %arg3[%c0, %c0_0, %c0_1] : memref<1x16x128xf32, #tpu.memory_space<vmem>>, vector<1x16x128xf32>
    %c0_2 = arith.constant 0 : index
    %c0_3 = arith.constant 0 : index
    %c0_4 = arith.constant 0 : index
    %c0_5 = arith.constant 0 : index
    %1 = vector.load %arg2[%c0_2, %c0_3, %c0_4, %c0_5] : memref<1x1x1x128xf32, #tpu.memory_space<vmem>>, vector<1x1x1x128xf32>
    %2 = vector.shape_cast %1 : vector<1x1x1x128xf32> to vector<1x1x128xf32>
    %c0_6 = arith.constant 0 : index
    %c0_7 = arith.constant 0 : index
    %c0_8 = arith.constant 0 : index
    %c0_9 = arith.constant 0 : index
    %3 = vector.load %arg4[%c0_6, %c0_7, %c0_8, %c0_9] : memref<1x1x1x128xf32, #tpu.memory_space<vmem>>, vector<1x1x1x128xf32>
    %4 = vector.shape_cast %3 : vector<1x1x1x128xf32> to vector<1x1x128xf32>
    %c0_i32 = arith.constant 0 : i32
    %5 = arith.cmpi eq, %arg1, %c0_i32 : i32
    %cst = arith.constant 0.000000e+00 : f32
    %6 = vector.broadcast %cst : f32 to vector<1x1x128xf32>
    %7 = arith.select %5, %6, %2 : vector<1x1x128xf32>
    %c0_i32_10 = arith.constant 0 : i32
    %8 = arith.cmpi eq, %arg1, %c0_i32_10 : i32
    %cst_11 = arith.constant 0.000000e+00 : f32
    %9 = vector.broadcast %cst_11 : f32 to vector<1x1x128xf32>
    %10 = arith.select %8, %9, %4 : vector<1x1x128xf32>
    %11 = tpu.iota {dimensions = array<i32: 1>} : vector<1x16x1xi32>
    %c0_i32_12 = arith.constant 0 : i32
    %12 = vector.broadcast %c0_i32_12 : i32 to vector<1x16x1xi32>
    %13 = arith.cmpi eq, %11, %12 : vector<1x16x1xi32>
    %c1_i32 = arith.constant 1 : i32
    %14 = tpu.dynamic_rotate %0 by %c1_i32 dim 1 : vector<1x16x128xf32>, i32 -> vector<1x16x128xf32>
    %15 = vector.shape_cast %13 : vector<1x16x1xi1> to vector<1x16x1xi1>
    %16 = vector.broadcast %15 : vector<1x16x1xi1> to vector<1x16x128xi1>
    %17 = vector.shape_cast %7 : vector<1x1x128xf32> to vector<1x1x128xf32>
    %18 = vector.broadcast %17 : vector<1x1x128xf32> to vector<1x16x128xf32>
    %19 = arith.select %16, %18, %14 : vector<1x16x128xi1>, vector<1x16x128xf32>
    %c15_i32 = arith.constant 15 : i32
    %20 = vector.broadcast %c15_i32 : i32 to vector<1x16x1xi32>
    %21 = arith.cmpi eq, %11, %20 : vector<1x16x1xi32>
    %c15_i32_13 = arith.constant 15 : i32
    %22 = tpu.dynamic_rotate %0 by %c15_i32_13 dim 1 : vector<1x16x128xf32>, i32 -> vector<1x16x128xf32>
    %23 = vector.shape_cast %21 : vector<1x16x1xi1> to vector<1x16x1xi1>
    %24 = vector.broadcast %23 : vector<1x16x1xi1> to vector<1x16x128xi1>
    %25 = vector.shape_cast %10 : vector<1x1x128xf32> to vector<1x1x128xf32>
    %26 = vector.broadcast %25 : vector<1x1x128xf32> to vector<1x16x128xf32>
    %27 = arith.select %24, %26, %22 : vector<1x16x128xi1>, vector<1x16x128xf32>
    %c0_14 = arith.constant 0 : index
    %c0_15 = arith.constant 0 : index
    %28 = vector.load %arg6[%c0_14, %c0_15] : memref<1x128xf32, #tpu.memory_space<vmem>>, vector<1x128xf32>
    %29 = vector.shape_cast %28 : vector<1x128xf32> to vector<128xf32>
    %30 = vector.shape_cast %29 : vector<128xf32> to vector<1x1x128xf32>
    %31 = vector.broadcast %30 : vector<1x1x128xf32> to vector<1x16x128xf32>
    %c8_i32 = arith.constant 8 : i32
    %32 = tpu.dynamic_rotate %19 by %c8_i32 dim 2 : vector<1x16x128xf32>, i32 -> vector<1x16x128xf32>
    %c120_i32 = arith.constant 120 : i32
    %33 = tpu.dynamic_rotate %19 by %c120_i32 dim 2 : vector<1x16x128xf32>, i32 -> vector<1x16x128xf32>
    %c0_16 = arith.constant 0 : index
    %c0_17 = arith.constant 0 : index
    %34 = vector.load %arg5[%c0_16, %c0_17] : memref<9x128xf32, #tpu.memory_space<vmem>>, vector<1x128xf32>
    %35 = vector.shape_cast %34 : vector<1x128xf32> to vector<128xf32>
    %36 = vector.shape_cast %35 : vector<128xf32> to vector<1x1x128xf32>
    %37 = vector.broadcast %36 : vector<1x1x128xf32> to vector<1x16x128xf32>
    %38 = arith.mulf %32, %37 : vector<1x16x128xf32>
    %39 = arith.addf %31, %38 : vector<1x16x128xf32>
    %c1 = arith.constant 1 : index
    %c0_18 = arith.constant 0 : index
    %40 = vector.load %arg5[%c1, %c0_18] : memref<9x128xf32, #tpu.memory_space<vmem>>, vector<1x128xf32>
    %41 = vector.shape_cast %40 : vector<1x128xf32> to vector<128xf32>
    %42 = vector.shape_cast %41 : vector<128xf32> to vector<1x1x128xf32>
    %43 = vector.broadcast %42 : vector<1x1x128xf32> to vector<1x16x128xf32>
    %44 = arith.mulf %19, %43 : vector<1x16x128xf32>
    %45 = arith.addf %39, %44 : vector<1x16x128xf32>
    %c2 = arith.constant 2 : index
    %c0_19 = arith.constant 0 : index
    %46 = vector.load %arg5[%c2, %c0_19] : memref<9x128xf32, #tpu.memory_space<vmem>>, vector<1x128xf32>
    %47 = vector.shape_cast %46 : vector<1x128xf32> to vector<128xf32>
    %48 = vector.shape_cast %47 : vector<128xf32> to vector<1x1x128xf32>
    %49 = vector.broadcast %48 : vector<1x1x128xf32> to vector<1x16x128xf32>
    %50 = arith.mulf %33, %49 : vector<1x16x128xf32>
    %51 = arith.addf %45, %50 : vector<1x16x128xf32>
    %c8_i32_20 = arith.constant 8 : i32
    %52 = tpu.dynamic_rotate %0 by %c8_i32_20 dim 2 : vector<1x16x128xf32>, i32 -> vector<1x16x128xf32>
    %c120_i32_21 = arith.constant 120 : i32
    %53 = tpu.dynamic_rotate %0 by %c120_i32_21 dim 2 : vector<1x16x128xf32>, i32 -> vector<1x16x128xf32>
    %c3 = arith.constant 3 : index
    %c0_22 = arith.constant 0 : index
    %54 = vector.load %arg5[%c3, %c0_22] : memref<9x128xf32, #tpu.memory_space<vmem>>, vector<1x128xf32>
    %55 = vector.shape_cast %54 : vector<1x128xf32> to vector<128xf32>
    %56 = vector.shape_cast %55 : vector<128xf32> to vector<1x1x128xf32>
    %57 = vector.broadcast %56 : vector<1x1x128xf32> to vector<1x16x128xf32>
    %58 = arith.mulf %52, %57 : vector<1x16x128xf32>
    %59 = arith.addf %51, %58 : vector<1x16x128xf32>
    %c4 = arith.constant 4 : index
    %c0_23 = arith.constant 0 : index
    %60 = vector.load %arg5[%c4, %c0_23] : memref<9x128xf32, #tpu.memory_space<vmem>>, vector<1x128xf32>
    %61 = vector.shape_cast %60 : vector<1x128xf32> to vector<128xf32>
    %62 = vector.shape_cast %61 : vector<128xf32> to vector<1x1x128xf32>
    %63 = vector.broadcast %62 : vector<1x1x128xf32> to vector<1x16x128xf32>
    %64 = arith.mulf %0, %63 : vector<1x16x128xf32>
    %65 = arith.addf %59, %64 : vector<1x16x128xf32>
    %c5 = arith.constant 5 : index
    %c0_24 = arith.constant 0 : index
    %66 = vector.load %arg5[%c5, %c0_24] : memref<9x128xf32, #tpu.memory_space<vmem>>, vector<1x128xf32>
    %67 = vector.shape_cast %66 : vector<1x128xf32> to vector<128xf32>
    %68 = vector.shape_cast %67 : vector<128xf32> to vector<1x1x128xf32>
    %69 = vector.broadcast %68 : vector<1x1x128xf32> to vector<1x16x128xf32>
    %70 = arith.mulf %53, %69 : vector<1x16x128xf32>
    %71 = arith.addf %65, %70 : vector<1x16x128xf32>
    %c8_i32_25 = arith.constant 8 : i32
    %72 = tpu.dynamic_rotate %27 by %c8_i32_25 dim 2 : vector<1x16x128xf32>, i32 -> vector<1x16x128xf32>
    %c120_i32_26 = arith.constant 120 : i32
    %73 = tpu.dynamic_rotate %27 by %c120_i32_26 dim 2 : vector<1x16x128xf32>, i32 -> vector<1x16x128xf32>
    %c6 = arith.constant 6 : index
    %c0_27 = arith.constant 0 : index
    %74 = vector.load %arg5[%c6, %c0_27] : memref<9x128xf32, #tpu.memory_space<vmem>>, vector<1x128xf32>
    %75 = vector.shape_cast %74 : vector<1x128xf32> to vector<128xf32>
    %76 = vector.shape_cast %75 : vector<128xf32> to vector<1x1x128xf32>
    %77 = vector.broadcast %76 : vector<1x1x128xf32> to vector<1x16x128xf32>
    %78 = arith.mulf %72, %77 : vector<1x16x128xf32>
    %79 = arith.addf %71, %78 : vector<1x16x128xf32>
    %c7 = arith.constant 7 : index
    %c0_28 = arith.constant 0 : index
    %80 = vector.load %arg5[%c7, %c0_28] : memref<9x128xf32, #tpu.memory_space<vmem>>, vector<1x128xf32>
    %81 = vector.shape_cast %80 : vector<1x128xf32> to vector<128xf32>
    %82 = vector.shape_cast %81 : vector<128xf32> to vector<1x1x128xf32>
    %83 = vector.broadcast %82 : vector<1x1x128xf32> to vector<1x16x128xf32>
    %84 = arith.mulf %27, %83 : vector<1x16x128xf32>
    %85 = arith.addf %79, %84 : vector<1x16x128xf32>
    %c8 = arith.constant 8 : index
    %c0_29 = arith.constant 0 : index
    %86 = vector.load %arg5[%c8, %c0_29] : memref<9x128xf32, #tpu.memory_space<vmem>>, vector<1x128xf32>
    %87 = vector.shape_cast %86 : vector<1x128xf32> to vector<128xf32>
    %88 = vector.shape_cast %87 : vector<128xf32> to vector<1x1x128xf32>
    %89 = vector.broadcast %88 : vector<1x1x128xf32> to vector<1x16x128xf32>
    %90 = arith.mulf %73, %89 : vector<1x16x128xf32>
    %91 = arith.addf %85, %90 : vector<1x16x128xf32>
    %c0_30 = arith.constant 0 : index
    %c0_31 = arith.constant 0 : index
    %c0_32 = arith.constant 0 : index
    %92 = vector.load %arg7[%c0_30, %c0_31, %c0_32] : memref<1x16x128xf32, #tpu.memory_space<vmem>>, vector<1x16x128xf32>
    tpu.vector_store %arg7[%c0_30, %c0_31, %c0_32], %91 {strides = array<i32>} : memref<1x16x128xf32, #tpu.memory_space<vmem>>, vector<1x16x128xf32>,
    return
  }
  func.func @transform_0(%arg0: i32, %arg1: i32) -> (i32, i32, i32, i32) {
    %c16_i32 = arith.constant 16 : i32
    %0 = arith.muli %arg1, %c16_i32 : i32
    %c1_i32 = arith.constant 1 : i32
    %1 = arith.subi %0, %c1_i32 : i32
    %c0_i32 = arith.constant 0 : i32
    %2 = arith.maxsi %1, %c0_i32 : i32
    %c0_i32_0 = arith.constant 0 : i32
    %c0_i32_1 = arith.constant 0 : i32
    %c0_i32_2 = arith.constant 0 : i32
    return %arg0, %2, %c0_i32_0, %c0_i32_1 : i32, i32, i32, i32
  }
  func.func @transform_1(%arg0: i32, %arg1: i32) -> (i32, i32, i32) {
    %c0_i32 = arith.constant 0 : i32
    %c0_i32_0 = arith.constant 0 : i32
    return %arg0, %arg1, %c0_i32 : i32, i32, i32
  }
  func.func @transform_2(%arg0: i32, %arg1: i32) -> (i32, i32, i32, i32) {
    %c1_i32 = arith.constant 1 : i32
    %0 = arith.addi %arg1, %c1_i32 : i32
    %c16_i32 = arith.constant 16 : i32
    %1 = arith.muli %0, %c16_i32 : i32
    %c15_i32 = arith.constant 15 : i32
    %2 = arith.minsi %1, %c15_i32 : i32
    %c0_i32 = arith.constant 0 : i32
    %c0_i32_0 = arith.constant 0 : i32
    %c0_i32_1 = arith.constant 0 : i32
    return %arg0, %2, %c0_i32, %c0_i32_0 : i32, i32, i32, i32
  }
  func.func @transform_3(%arg0: i32, %arg1: i32) -> (i32, i32) {
    %c0_i32 = arith.constant 0 : i32
    %c0_i32_0 = arith.constant 0 : i32
    %c0_i32_1 = arith.constant 0 : i32
    return %c0_i32, %c0_i32_0 : i32, i32
  }
  func.func @transform_4(%arg0: i32, %arg1: i32) -> (i32, i32) {
    %c0_i32 = arith.constant 0 : i32
    %c0_i32_0 = arith.constant 0 : i32
    %c0_i32_1 = arith.constant 0 : i32
    return %c0_i32, %c0_i32_0 : i32, i32
  }
  func.func @transform_5(%arg0: i32, %arg1: i32) -> (i32, i32, i32) {
    %c0_i32 = arith.constant 0 : i32
    %c0_i32_0 = arith.constant 0 : i32
    return %arg0, %arg1, %c0_i32 : i32, i32, i32
  }
}

</mosaic_0001>

<bundles_post_ra>
// kernel: tpu_custom_call.1
= control target key start
LH: loop header
LB: loop body
LE: loop exit
PB: predicated region body
PF: predicated region fallthrough
CT: control target
= control target key end

     0   :  { %s1383_s0 = inlined_call_operand.hbm [shape: f32[2,16,1,128], index: 0, kind: input, shape index: {}]   ;;  %s1384_s1 = inlined_call_operand.hbm [shape: f32[2,16,128], index: 1, kind: input, shape index: {}]   ;;  %s1385_s2 = inlined_call_operand.hbm [shape: f32[2,16,1,128], index: 2, kind: input, shape index: {}]   ;;  %s1386_s3 = inlined_call_operand.hbm [shape: f32[9,128], index: 3, kind: input, shape index: {}]   ;;  %s1387_s4 = inlined_call_operand.vmem [shape: f32[1,128], index: 4, kind: input, shape index: {}]   ;;  %s1388_s5 = inlined_call_operand.hbm [shape: f32[2,16,128], index: 5, kind: output, shape index: {}]  }
   0x1   :  { %1407 = sst [smem:[#allocation21_spill]] %s1383_s0 }
   0x2   :  { %1408 = sst [smem:[#allocation22_spill]] %s1384_s1 }
   0x3   :  { %10 = vsyncpa [#allocation3], 0 }
   0x4   :  { %12 = vsyncpa [#allocation3 + $0x1], 0 }
   0x5   :  { %13 = vsyncpa [#allocation6], 0 }
   0x6   :  { %15 = vsyncpa [#allocation6 + $0x1], 0 }
   0x7   :  { %16 = vsyncpa [#allocation9], 0 }
   0x8   :  { %17 = vsyncpa [#allocation4], 0 }
   0x9   :  { %19 = vsyncpa [#allocation4 + $0x1], 0  ;;  %s1079_s18 = smov 0   ;;  %s1081_s19 = smov 0  }
   0xa   :  { %s1083_s20 = smov 0   ;;  %s1085_s21 = smov 0  }
   0xb   :  { %s1087_s22 = smov 0   ;;  %s1089_s23 = smov 0  }
   0xc LB: > { %1409 = sst [smem:[#allocation15_spill]] %s1024_s20  ;;  %s37_s24 = sadd.s32 1, %s1032_s22  ;;  %s1036_s23 = sphi %s1089_s23, %s25_s23   ;;  %s1032_s22 = sphi %s1087_s22, %s1443_s22   ;;  %s1028_s21 = sphi %s1085_s21, %s1442_s21   ;;  %s1024_s20 = sphi %s1083_s20, %s1441_s20   ;;  %s1020_s19 = sphi %s1081_s19, %s1445_s19   ;;  %s1016_s18 = sphi %s1079_s18, %s1444_s18  }
   0xd   : > { %1410 = sst [smem:[#allocation16_spill]] %s1032_s22  ;;  %s54_s25 = sadd.s32 1, %s1024_s20 }
   0xe   : > { %1411 = sst [smem:[#allocation17_spill]] %s1036_s23  ;;  %p39_p0 = scmp.ge.s32.totalorder %s37_s24, 2 }
   0xf   : > { %p1389_p1 = scmp.ne.s32.totalorder %s1024_s20, %s1020_s19  ;;  %p62_p2 = scmp.eq.s32.totalorder %s1036_s23, 0 }
  0x10   : > { %s1447_s24 = smov (%p39_p0, %s37_s24), 0  ;;  %p770_p6 = scmp.lt.s32.totalorder %s1036_s23, 2 }
  0x11   : > { %1412 = sst [smem:[#allocation18_spill]] %s1447_s24  ;;  %p63_p3 = por %p62_p2, %p1389_p1 }
  0x12   : > { %s49_s26 = ssub.s32 %s1032_s22, %s1447_s24  ;;  %s1124_s27 = sand.u32 1, %s1024_s20  }
  0x13   : > { %p52_p5 = scmp.eq.s32.totalorder %s49_s26, 0  ;;  %s1127_s28 = sshll.u32 %s1032_s22, 8 }
  0x14   : > { %p1132_p7 = pnand %p770_p6, %p63_p3  ;;  %s264_s6 = sand.u32 1, %s1036_s23  }
  0x15   : > { %s1130_s29 = scalar_select %p52_p5, %s1024_s20, %s54_s25  }
  0x16   : > { %s1414_s30 = scalar_select %p1132_p7, 1, 0 }
  0x17   : > { %1413 = sst [smem:[#allocation19_spill]] %s1130_s29  ;;  %s709_s7 = sshll.u32 %s1124_s27, 4 }
  0x18   : > { %s1415_s1 = sld [smem:[#allocation22_spill]]  ;;  %s268_s11 = scalar_lea.vmem [#allocation5], %s709_s7 }
  0x19   : > { %s277_s12 = sshll.u32 %s268_s11, 4  ;;  %s1146_s13 = scalar_lea.sflag [#allocation6], %s264_s6  ;;  %s1144_s12 = int_to_ptr.vmem [resolvable:$true] %s277_s12 }
  0x1a   : > { %p1152_p9 = pneg %p1132_p7 }
  0x1c   : > { %s1416_s15 = scalar_select %p1152_p9, 1, 0 }
  0x1e   : > { %s1142_s10 = scalar_lea.hbm %s1415_s1, %s1127_s28  ;;  %s833_s25 = scalar_lea.hbm %s1415_s1, 512 }
  0x1f   : > { %s828_s14 = scalar_lea.hbm %s1142_s10, 256  ;;  %p834_p12 = scmp.lt.u32.totalorder %s1142_s10, %s1415_s1 }
  0x20   : > { %p829_p8 = scmp.ne.s32.totalorder %s1142_s10, %s828_s14  ;;  %p835_p13 = scmp.lt.u32.totalorder %s833_s25, %s828_s14 }
  0x21   : > { %p837_p2 = scmp.lt.u32.totalorder %s828_s14, %s1142_s10 }
  0x22   : > { %p831_p10 = pnand %p1152_p9, %p829_p8  ;;  %p836_p0 = por %p835_p13, %p834_p12 }
  0x24   : > { %p832_p11 = pneg %p831_p10  ;;  %p838_p3 = por %p837_p2, %p836_p0 }
  0x26   : > { %p839_p5 = pnand %p838_p3, %p832_p11 }
  0x28   : > { %842 = shalt.err (!%p839_p5)
}
  0x29   : > { %s843_s6 = scalar_lea.vmem %s1144_s12, 256  ;;  %s1038_s8 = smov [#allocation5]  }
  0x2a   : > { %p844_p6 = scmp.ne.s32.totalorder %s1144_s12, %s843_s6  ;;  %s848_s9 = sshll.u32 %s1038_s8, 4  ;;  %s849_s9 = int_to_ptr.vmem [resolvable:$false] %s848_s9 }
  0x2b   : > { %s850_s11 = scalar_lea.vmem %s849_s9, 512  ;;  %p851_p4 = scmp.lt.s32.totalorder %s1144_s12, %s849_s9 }
  0x2c   : > { %p846_p8 = pnand %p844_p6, %p1152_p9  ;;  %p852_p1 = scmp.lt.s32.totalorder %s850_s11, %s843_s6 }
  0x2e   : > { %p847_p10 = pneg %p846_p8  ;;  %p853_p12 = por %p852_p1, %p851_p4 }
  0x30   : > { %p854_p13 = pnand %p853_p12, %p847_p10 }
  0x32   : > { %857 = shalt.err (!%p854_p13)
}
  0x33   : > { %s1390_s14 = smov 128   ;;  %s1391_s16 = smov 8  }
  0x34   : > { %761 = dma.hbm_to_vmem [thread:$0]  (!%p1132_p7), %s1142_s10, 256, %s1144_s12, %s1146_s13, %s1390_s14, %s1390_s14, %s1391_s16  }
  0x35   : > { %s1180_s17 = sadd.s32 4294967295, %s1036_s23   ;;  %s703_s25 = sadd.s32 4294967294, %s1036_s23  }
  0x36   : > { %p67_p1 = scmp.ne.s32.totalorder %s1020_s19, %s1016_s18  ;;  %p1395_p4 = scmp.eq.s32.totalorder %s1180_s17, 0 }
  0x37   : > { %p199_p11 = scmp.eq.s32.totalorder %s1180_s17, 1  ;;  %p205_p0 = scmp.eq.s32.totalorder %s703_s25, 1 }
  0x38   : > { %p704_p2 = scmp.ge.s32.totalorder %s1036_s23, 1  ;;  %p1190_p3 = por %p1395_p4, %p67_p1 }
  0x39   : > { %p1418_p5 = scmp.ne.s32.totalorder %s1024_s20, %s1020_s19  ;;  %p1201_p8 = por %p205_p0, %p67_p1 }
  0x3a   : > { %s1417_s26 = scalar_select %p1190_p3, 1, 0 }
  0x3b   : > { %p1197_p6 = por %p199_p11, %p1418_p5  ;;  %p212_p10 = scmp.lt.s32.totalorder %s1036_s23, 3 }
  0x3c   : > { %s1420_s12 = scalar_select %p1201_p8, 1, 0 }
  0x3d   : > { %s1419_s10 = scalar_select %p1197_p6, 1, 0 }
  0x3e   : > { %1421 = sst [smem:[#allocation20_spill]] %s1420_s12  ;;  %p1206_p12 = pnand %p704_p2, %p212_p10 }
  0x3f   : > { %s1041_s6 = smov [#allocation8]   ;;  %s1423_s0 = sld [smem:[#allocation21_spill]] }
  0x40   : > { %s1422_s7 = scalar_select %p1206_p12, 1, 0 }
  0x41   : > { %s224_s8 = sshll.u32 %s1041_s6, 4  ;;  %p751_p13 = pneg %p1206_p12  ;;  %s1210_s8 = int_to_ptr.vmem [resolvable:$true] %s224_s8 }
  0x42   : > { %s244_s14 = scalar_lea.vmem [#allocation2], %s1124_s27  ;;  %s242_s6 = scalar_lea.sflag [#allocation3], %s1124_s27 }
  0x43   : > { %s257_s16 = sshll.u32 %s244_s14, 4  ;;  %p1223_p1 = pnand %p751_p13, %p1395_p4  ;;  %s258_s16 = int_to_ptr.vmem [resolvable:$true] %s257_s16 }
  0x45   : > { %s1218_s25 = scalar_lea.hbm %s1423_s0, %s1127_s28  ;;  %s863_s22 = scalar_lea.hbm %s1423_s0, 512 }
  0x46   : > { %s1424_s1 = scalar_select %p1223_p1, 1, 0 }
  0x47   : > { %s858_s24 = scalar_lea.hbm %s1218_s25, 16  ;;  %p864_p5 = scmp.lt.u32.totalorder %s1218_s25, %s1423_s0 }
  0x48   : > { %p859_p11 = scmp.ne.s32.totalorder %s1218_s25, %s858_s24  ;;  %p865_p10 = scmp.lt.u32.totalorder %s863_s22, %s858_s24 }
  0x49   : > { %p867_p4 = scmp.lt.u32.totalorder %s858_s24, %s1218_s25 }
  0x4a   : > { %p861_p0 = pnand %p859_p11, %p1152_p9  ;;  %p866_p13 = por %p865_p10, %p864_p5 }
  0x4c   : > { %p862_p2 = pneg %p861_p0  ;;  %p868_p8 = por %p867_p4, %p866_p13 }
  0x4e   : > { %p869_p6 = pnand %p868_p8, %p862_p2 }
  0x50   : > { %872 = shalt.err (!%p869_p6)
}
  0x51   : > { %s873_s14 = scalar_lea.vmem %s258_s16, 16  ;;  %s1042_s23 = smov [#allocation2]  }
  0x52   : > { %p874_p3 = scmp.ne.s32.totalorder %s258_s16, %s873_s14  ;;  %s878_s12 = sshll.u32 %s1042_s23, 4  ;;  %s879_s12 = int_to_ptr.vmem [resolvable:$false] %s878_s12 }
  0x53   : > { %s880_s9 = scalar_lea.vmem %s879_s12, 32  ;;  %p881_p12 = scmp.lt.s32.totalorder %s258_s16, %s879_s12 }
  0x54   : > { %p876_p11 = pnand %p874_p3, %p1152_p9  ;;  %p882_p1 = scmp.lt.s32.totalorder %s880_s9, %s873_s14 }
  0x56   : > { %p877_p0 = pneg %p876_p11  ;;  %p883_p7 = por %p882_p1, %p881_p12 }
  0x58   : > { %p884_p5 = pnand %p883_p7, %p877_p0 }
  0x5a   : > { %887 = shalt.err (!%p884_p5)
}
  0x5b   : > { %p1425_p10 = scmp.ne.s32.totalorder %s1414_s30, 0  ;;  %s888_s24 = scalar_lea.hbm %s1386_s3, 256 }
  0x5c   : > { %p889_p4 = scmp.ne.s32.totalorder %s1386_s3, %s888_s24  ;;  %p1426_p3 = scmp.ne.s32.totalorder %s1424_s1, 0 }
  0x5d   : > { %758 = dma.hbm_to_vmem [thread:$0]  (!%p1425_p10), %s1218_s25, 16, %s258_s16, %s242_s6  }
  0x5e   : > { %p890_p6 = pneg %p1426_p3  ;;  %p895_p7 = scmp.lt.u32.totalorder %s888_s24, %s1386_s3 }
  0x60   : > { %p891_p8 = pnand %p890_p6, %p889_p4 }
  0x62   : > { %p892_p2 = pneg %p891_p8 }
  0x64   : > { %p897_p12 = pnand %p895_p7, %p892_p2 }
  0x66   : > { %900 = shalt.err (!%p897_p12)
}
  0x67   : > { %s901_s16 = scalar_lea.vmem %s1210_s8, 256  ;;  %p909_p0 = scmp.lt.s32.totalorder %s1210_s8, %s1210_s8 }
  0x68   : > { %p902_p1 = scmp.ne.s32.totalorder %s1210_s8, %s901_s16  ;;  %p910_p5 = scmp.lt.s32.totalorder %s901_s16, %s901_s16 }
  0x6a   : > { %p904_p13 = pnand %p902_p1, %p890_p6  ;;  %p911_p10 = por %p910_p5, %p909_p0 }
  0x6c   : > { %p905_p11 = pneg %p904_p13 }
  0x6e   : > { %p912_p9 = pnand %p911_p10, %p905_p11 }
  0x70   : > { %915 = shalt.err (!%p912_p9)
}
  0x71   : > { %s1427_s25 = smov 8   ;;  %s1428_s6 = smov 128  }
  0x72   : > { %754 = dma.hbm_to_vmem [thread:$0]  (!%p1426_p3), %s1386_s3, 256, %s1210_s8, [#allocation9], %s1428_s6, %s1428_s6, %s1427_s25  }
  0x73   : > { %s736_s20 = sadd.s32 240, %s1127_s28  ;;  %s290_s22 = scalar_lea.vmem [#allocation7], %s1124_s27 }
  0x74   : > { %s303_s24 = sshll.u32 %s290_s22, 4  ;;  %s301_s23 = scalar_lea.hbm %s1385_s2, %s736_s20  ;;  %s304_s24 = int_to_ptr.vmem [resolvable:$true] %s303_s24 }
  0x75   : > { %s916_s1 = scalar_lea.hbm %s301_s23, 16  ;;  %p1429_p10 = scmp.ne.s32.totalorder %s1416_s15, 0 }
  0x76   : > { %p917_p9 = scmp.ne.s32.totalorder %s301_s23, %s916_s1  ;;  %s921_s14 = scalar_lea.hbm %s1385_s2, 512 }
  0x77   : > { %p922_p3 = scmp.lt.u32.totalorder %s301_s23, %s1385_s2  ;;  %p923_p8 = scmp.lt.u32.totalorder %s921_s14, %s916_s1 }
  0x78   : > { %p919_p4 = pnand %p917_p9, %p1429_p10  ;;  %p925_p7 = scmp.lt.u32.totalorder %s916_s1, %s301_s23 }
  0x79   : > { %p924_p2 = por %p923_p8, %p922_p3 }
  0x7a   : > { %p920_p6 = pneg %p919_p4 }
  0x7b   : > { %p926_p12 = por %p925_p7, %p924_p2 }
  0x7d   : > { %p927_p1 = pnand %p926_p12, %p920_p6 }
  0x7f   : > { %930 = shalt.err (!%p927_p1)
}
  0x80   : > { %s931_s27 = scalar_lea.vmem %s304_s24, 16  ;;  %s1043_s28 = smov [#allocation7]  }
  0x81   : > { %p932_p13 = scmp.ne.s32.totalorder %s304_s24, %s931_s27  ;;  %s936_s8 = sshll.u32 %s1043_s28, 4  ;;  %s937_s8 = int_to_ptr.vmem [resolvable:$false] %s936_s8 }
  0x82   : > { %s938_s25 = scalar_lea.vmem %s937_s8, 32  ;;  %p939_p5 = scmp.lt.s32.totalorder %s304_s24, %s937_s8 }
  0x83   : > { %p934_p11 = pnand %p932_p13, %p1429_p10  ;;  %p940_p9 = scmp.lt.s32.totalorder %s938_s25, %s931_s27 }
  0x85   : > { %p935_p0 = pneg %p934_p11  ;;  %p941_p4 = por %p940_p9, %p939_p5 }
  0x87   : > { %p942_p3 = pnand %p941_p4, %p935_p0 }
  0x89   : > { %945 = shalt.err (!%p942_p3)
}
  0x8a   : > { %p1430_p8 = scmp.ne.s32.totalorder %s1414_s30, 0  ;;  %p1431_p6 = scmp.ne.s32.totalorder %s1422_s7, 0 }
  0x8b   : > { %s1290_s0 = sand.u32 (!%p1431_p6), 1, %s1020_s19   ;;  %p1432_p10 = scmp.ne.s32.totalorder (!%p1431_p6), %s1417_s26, 0 }
  0x8c   : > { %764 = dma.hbm_to_vmem [thread:$0]  (!%p1430_p8), %s301_s23, 16, %s304_s24, %s1146_s13  }
  0x8d   : > { %312 = sbr.rel (%p1431_p6) target bundleno = 315 (0x13b), region = 40  ;;  %s315_s15 = scalar_lea.sflag (!%p1431_p6), [#allocation3], %s1290_s0 }
  0x94   : > { %999 = dma.done.wait (%p1432_p10), %s315_s15, 16  }
  0x95   : > { %1001 = vsyncadd (%p1432_p10), %s315_s15, 4294967280  ;;  %s322_s30 = sand.u32 1, %s1180_s17   ;;  %s715_s13 = sshll.u32 %s1290_s0, 4 }
  0x96   : > { %s323_s6 = scalar_lea.sflag [#allocation6], %s322_s30  ;;  %s326_s7 = scalar_lea.vmem [#allocation5], %s715_s13 }
  0x97   : > { %1003 = dma.done.wait (%p1432_p10), %s323_s6, 272  }
  0x98   : > { %1005 = vsyncadd (%p1432_p10), %s323_s6, 4294967024  ;;  %p1433_p2 = scmp.eq.s32.totalorder %s1180_s17, 0 }
  0x9a   : > { %1007 = dma.done.wait (%p1433_p2), [#allocation9], 256   ;;  %p1434_p7 = pmov %p1433_p2 }
  0x9b   : > { %v393_v0 = vlaneseq  ;;  %v1309_v3 = vld [vmem:[%s326_s7] sm:$0xff]  ;;  %v384_v4 = vld [vmem:[%s326_s7 + $0x8] sm:$0xff]  ;;  %v1044_v7 = vmov 0.0   ;;  %s1045_s26 = smov 120   ;;  %s1046_s20 = smov 8  }
  0x9c   : > { %1009 = vsyncadd (%p1434_p7), [#allocation9], 4294967040  ;;  %v398_v5 = vrot.slane %v1309_v3, 7  ;;  %v399_v6 = vrot.slane %v384_v4, 7  ;;  %v417_v13 = vrot.slane %v1309_v3, 1  ;;  %v418_v14 = vrot.slane %v384_v4, 1 }
  0x9d   : > { %v394_v1 = vshrl.u32 %v393_v0, 7  ;;  %v720_v18 = vld [vmem:[#allocation8 + $0x1] ss:$0 sm:$0xff]  ;;  %v719_v19 = vld [vmem:[#allocation8] ss:$0 sm:$0xff]  ;;  %s372_s24 = scalar_lea.vmem [#allocation10], %s715_s13 }
  0x9e   : > { %v718_v21 = vld [vmem:[%s1387_s4] ss:$0 sm:$0xff]  ;;  %v721_v25 = vld [vmem:[#allocation8 + $0x2] ss:$0 sm:$0xff]  ;;  %v722_v27 = vld [vmem:[#allocation8 + $0x3] ss:$0 sm:$0xff] }
  0x9f   : > { %v410_v2 = vsub.s32 0, %v394_v1  ;;  %vm400_vm0 = vcmp.lt.s32.totalorder %v394_v1, 1  ;;  %vm396_vm1 = vcmp.eq.s32.totalorder %v394_v1, 0  ;;  %v395_v12 = vadd.s32 8, %v394_v1  ;;  %v723_v30 = vld [vmem:[#allocation8 + $0x4] ss:$0 sm:$0xff] }
  0xa0   : > { %v401_v9 = vsel %vm400_vm0, %v398_v5, %v399_v6  ;;  %v402_v10 = vsel %vm400_vm0, %v399_v6, %v398_v5  ;;  %vm419_vm2 = vcmp.lt.s32.totalorder %v394_v1, 7  ;;  %v499_v38 = vmul.f32 %v723_v30, %v384_v4  ;;  %v724_v44 = vld [vmem:[#allocation8 + $0x5] ss:$0 sm:$0xff]  ;;  %v726_v51 = vld [vmem:[#allocation8 + $0x7] ss:$0 sm:$0xff]  ;;  %s564_s29 = sshll.u32 %s372_s24, 4  ;;  %s1328_s29 = int_to_ptr.vmem [resolvable:$true] %s564_s29 }
  0xa1   : > { %v411_v8 = vrot.slane %v1044_v7, %v410_v2  ;;  %447 = vrot.lane.b32.xlu1 %v401_v9, %s1045_s26  ;;  %443 = vrot.lane.b32.xlu0 %v401_v9, %s1046_s20  ;;  %vm416_vm3 = vcmp.eq.s32.totalorder %v395_v12, 15  ;;  %v421_v15 = vsel %vm419_vm2, %v418_v14, %v417_v13  ;;  %v420_v17 = vsel %vm419_vm2, %v417_v13, %v418_v14  ;;  %v725_v54 = vld [vmem:[#allocation8 + $0x6] ss:$0 sm:$0xff]  ;;  %v727_v1 = vld [vmem:[#allocation8 + $0x8] ss:$0 sm:$0xff]  ;;  %s737_s11 = sshll.u32 %s1028_s21, 8 }
  0xa2   : > { %v464_v23 = vmul.f32 %v720_v18, %v401_v9  ;;  %v498_v48 = vmul.f32 %v723_v30, %v1309_v3  ;;  %v533_v58 = vmul.f32 %v726_v51, %v420_v17  ;;  %s1333_s12 = scalar_lea.hbm %s1388_s5, %s737_s11  ;;  %s549_s16 = scalar_lea.sflag [#allocation4], %s1290_s0 }
  0xa3   : > { %v413_v11 = vsel %vm396_vm1, %v411_v8, %v402_v10  ;;  %v433_v16 = vsel %vm416_vm3, %v411_v8, %v421_v15  ;;  %s946_s21 = scalar_lea.vmem %s1328_s29, 256  ;;  %p1435_p1 = scmp.ne.s32.totalorder %s1419_s10, 0 }
  0xa4   : > { %v463_v31 = vmul.f32 %v720_v18, %v413_v11  ;;  %v534_v57 = vmul.f32 %v726_v51, %v433_v16  ;;  %p947_p12 = scmp.ne.s32.totalorder %s1328_s29, %s946_s21  ;;  %s1047_s14 = smov [#allocation10]  }
  0xa5   : > { %478 = vrot.lane.b32.xlu1 %v384_v4, %s1046_s20  ;;  %441 = vrot.lane.b32.xlu0 %v413_v11, %s1046_s20  ;;  %s950_s9 = sshll.u32 %s1047_s14, 4  ;;  %s951_s9 = int_to_ptr.vmem [resolvable:$false] %s950_s9 }
  0xa6   : > { %p948_p13 = pnand %p947_p12, %p1435_p1  ;;  %s952_s27 = scalar_lea.vmem %s951_s9, 512 }
  0xa7   : > { %p953_p0 = scmp.lt.s32.totalorder %s1328_s29, %s951_s9  ;;  %p954_p5 = scmp.lt.s32.totalorder %s952_s27, %s946_s21 }
  0xa8   : > { %p949_p11 = pneg %p948_p13 }
  0xa9   : > { %445 = vrot.lane.b32.xlu1 %v413_v11, %s1045_s26  ;;  %476 = vrot.lane.b32.xlu0 %v1309_v3, %s1046_s20  ;;  %p955_p9 = por %p954_p5, %p953_p0 }
  0xab   : > { %p956_p4 = pnand %p955_p9, %p949_p11 }
  0xad   : > { %482 = vrot.lane.b32.xlu1 %v384_v4, %s1045_s26  ;;  %480 = vrot.lane.b32.xlu0 %v1309_v3, %s1045_s26 }
  0xb1   : > { %513 = vrot.lane.b32.xlu1 %v433_v16, %s1046_s20  ;;  %511 = vrot.lane.b32.xlu0 %v420_v17, %s1046_s20 }
  0xb5   : > { %517 = vrot.lane.b32.xlu1 %v433_v16, %s1045_s26  ;;  %515 = vrot.lane.b32.xlu0 %v420_v17, %s1045_s26 }
 0x113   : > { %v448_v20 = vpop.permute.xlu1 %447  ;;  %v444_v22 = vpop.permute.xlu0 %443 }
 0x114   : > { %v455_v24 = vmul.f32 %v719_v19, %v444_v22  ;;  %v473_v32 = vmul.f32 %v721_v25, %v448_v20 }
 0x116   : > { %v457_v26 = vadd.f32 %v718_v21, %v455_v24 }
 0x117   : > { %v479_v28 = vpop.permute.xlu1 %478  ;;  %v442_v29 = vpop.permute.xlu0 %441 }
 0x118   : > { %v466_v33 = vadd.f32 %v464_v23, %v457_v26  ;;  %v454_v34 = vmul.f32 %v719_v19, %v442_v29  ;;  %v490_v36 = vmul.f32 %v722_v27, %v479_v28 }
 0x11a   : > { %v475_v35 = vadd.f32 %v473_v32, %v466_v33  ;;  %v456_v37 = vadd.f32 %v718_v21, %v454_v34 }
 0x11b   : > { %v446_v39 = vpop.permute.xlu1 %445  ;;  %v477_v40 = vpop.permute.xlu0 %476 }
 0x11c   : > { %v492_v41 = vadd.f32 %v490_v36, %v475_v35  ;;  %v465_v42 = vadd.f32 %v463_v31, %v456_v37  ;;  %v472_v43 = vmul.f32 %v721_v25, %v446_v39  ;;  %v489_v46 = vmul.f32 %v722_v27, %v477_v40 }
 0x11e   : > { %v474_v45 = vadd.f32 %v472_v43, %v465_v42  ;;  %v501_v47 = vadd.f32 %v499_v38, %v492_v41 }
 0x11f   : > { %v483_v49 = vpop.permute.xlu1 %482  ;;  %v481_v50 = vpop.permute.xlu0 %480 }
 0x120   : > { %v491_v52 = vadd.f32 %v489_v46, %v474_v45  ;;  %v508_v53 = vmul.f32 %v724_v44, %v483_v49  ;;  %v507_v56 = vmul.f32 %v724_v44, %v481_v50 }
 0x122   : > { %v500_v55 = vadd.f32 %v498_v48, %v491_v52  ;;  %v510_v61 = vadd.f32 %v508_v53, %v501_v47 }
 0x123   : > { %v514_v59 = vpop.permute.xlu1 %513  ;;  %v512_v60 = vpop.permute.xlu0 %511 }
 0x124   : > { %v509_v62 = vadd.f32 %v507_v56, %v500_v55  ;;  %v525_v63 = vmul.f32 %v725_v54, %v514_v59  ;;  %v524_v0 = vmul.f32 %v725_v54, %v512_v60 }
 0x126   : > { %v527_v2 = vadd.f32 %v525_v63, %v510_v61  ;;  %v526_v3 = vadd.f32 %v524_v0, %v509_v62 }
 0x127   : > { %v518_v4 = vpop.permute.xlu1 %517  ;;  %v516_v5 = vpop.permute.xlu0 %515 }
 0x128   : > { %v536_v6 = vadd.f32 %v534_v57, %v527_v2  ;;  %v543_v7 = vmul.f32 %v727_v1, %v518_v4  ;;  %v535_v8 = vadd.f32 %v533_v58, %v526_v3  ;;  %v542_v9 = vmul.f32 %v727_v1, %v516_v5 }
 0x12a   : > { %v545_v10 = vadd.f32 %v543_v7, %v536_v6  ;;  %v544_v11 = vadd.f32 %v542_v9, %v535_v8 }
 0x12c   : > { %547 = vst [vmem:[%s372_s24 + $0x8] sm:$0xff] %v545_v10  ;;  %546 = vst [vmem:[%s372_s24] sm:$0xff] %v544_v11 }
 0x12d   : > { %959 = shalt.err (!%p956_p4)
}
 0x12e   : > { %s960_s28 = scalar_lea.hbm %s1333_s12, 256  ;;  %s964_s15 = scalar_lea.hbm %s1388_s5, 512 }
 0x12f   : > { %p961_p3 = scmp.ne.s32.totalorder %s1333_s12, %s960_s28  ;;  %p965_p10 = scmp.lt.u32.totalorder %s1333_s12, %s1388_s5 }
 0x130   : > { %p966_p2 = scmp.lt.u32.totalorder %s964_s15, %s960_s28  ;;  %p968_p12 = scmp.lt.u32.totalorder %s960_s28, %s1333_s12 }
 0x131   : > { %p962_p8 = pnand %p961_p3, %p1435_p1 }
 0x132   : > { %p967_p7 = por %p966_p2, %p965_p10 }
 0x133   : > { %p963_p6 = pneg %p962_p8 }
 0x134   : > { %p969_p13 = por %p968_p12, %p967_p7 }
 0x136   : > { %p970_p11 = pnand %p969_p13, %p963_p6 }
 0x138   : > { %973 = shalt.err (!%p970_p11)
}
 0x139   : > { %s1048_s6 = smov 128  }
 0x13a   : > { %749 = dma.vmem_to_hbm [thread:$0]  (%p1435_p1), %s1328_s29, 256, %s1333_s12, %s549_s16, %s1048_s6, %s1048_s6, %s1046_s20  }
 0x13b PF: > { %s1436_s7 = sld [smem:[#allocation20_spill]]  ;;  %s1437_s26 = sld [smem:[#allocation17_spill]] }
 0x13c   : > { %s579_s17 = sand.u32 1, %s1016_s18  }
 0x13d   : > { %s580_s22 = scalar_lea.sflag [#allocation4], %s579_s17 }
 0x141   : > { %p1438_p0 = scmp.ne.s32.totalorder %s1436_s7, 0  ;;  %p1439_p5 = scmp.ge.s32.totalorder %s1437_s26, 2 }
 0x143   : > { %p766_p9 = pnand %p1439_p5, %p1438_p0 }
 0x145   : > { %1011 = dma.done.wait (!%p766_p9), %s580_s22, 256  }
 0x146   : > { %1013 = vsyncadd (!%p766_p9), %s580_s22, 4294967040  ;;  %s25_s23 = sadd.s32 1, %s1437_s26   ;;  %s1440_s10 = sld [smem:[#allocation15_spill]] }
 0x147   : > { %p22_p4 = scmp.ge.s32.totalorder %s25_s23, 4   ;;  %s1441_s20 = sld [smem:[#allocation19_spill]] }
 0x148   : > { %s1442_s21 = sld [smem:[#allocation16_spill]]  ;;  %s1443_s22 = sld [smem:[#allocation18_spill]] }
 0x149   : > { %s1444_s18 = smov %s1020_s19  ;;  %24 = sbr.rel (!%p22_p4) target bundleno = 12 (0xc), region = 113 }
 0x14c   : > { %s1445_s19 = smov %s1440_s10 }
 0x150   :  { %585 = vsyncpa [#allocation3], 1 }
 0x151   :  { %587 = vsyncpa [#allocation3 + $0x1], 1 }
 0x152   :  { %588 = vsyncpa [#allocation6], 1 }
 0x153   :  { %590 = vsyncpa [#allocation6 + $0x1], 1 }
 0x154   :  { %591 = vsyncpa [#allocation9], 1 }
 0x155   :  { %592 = vsyncpa [#allocation4], 1 }
 0x156   :  { %594 = vsyncpa [#allocation4 + $0x1], 1 }

</bundles_post_ra>
